<compile_context>
chip_gen: v7x
topology: tpu7x:2x2x1
jax: 0.10.0
libtpu: 0.0.40
codegen_flags: <defaults>
</compile_context>

<pallas_src>
import functools

import jax
import jax.numpy as jnp
from jax.experimental import pallas as pl
from jax.experimental.pallas import tpu as pltpu


def _round_up(x, m):
    return (x + m - 1) // m * m


# ---------------------------------------------------------------------------
# Fused Pallas kernel: L x (GCNConv + ReLU), last conv repeated, global max pool
# ---------------------------------------------------------------------------
def _fused_gcn_stack_kernel(a_ref, x_ref, w_ref, b_ref, o_ref, *,
                            num_layers, n_real, n_pad, compute_dtype):
    """All refs are whole-array VMEM blocks (no grid, single-buffered).

    a_ref: [Np, Np]      compute_dtype   dense GCN-normalized adjacency
    x_ref: [Np, Hp]      compute_dtype   node features (lane-padded)
    w_ref: [L,  Hp, Hp]  compute_dtype   conv weights (zero-padded)
    b_ref: [L,  1,  Hp]  float32         conv biases  (zero-padded)
    o_ref: [1,  Hp]      float32         global-max-pooled output
    """
    a = a_ref[...]          # resident once for all layers
    x = x_ref[...]          # compute_dtype

    def conv_relu(x_cd, i):
        # X @ W  (feature transform; PyG GCNConv.lin has no bias)
        xw = jnp.dot(x_cd, w_ref[i], preferred_element_type=jnp.float32)
        # A_norm @ (X W)  (symmetric-normalized aggregation with self loops)
        agg = jnp.dot(a, xw.astype(compute_dtype),
                      preferred_element_type=jnp.float32)
        # + bias, ReLU — f32 epilogue
        return jnp.maximum(agg + b_ref[i], 0.0)

    for i in range(num_layers):
        x = conv_relu(x, i).astype(compute_dtype)

    # The module applies the last conv a second time to produce conv_output.
    conv_out = conv_relu(x, num_layers - 1)      # f32, post-ReLU (>= 0)

    # Padded rows may carry ReLU(bias) > 0; since real rows are post-ReLU (>=0),
    # masking pad rows to 0.0 is neutral for the column-wise max.  Statically
    # elide the mask entirely when there is no row padding.
    if n_real < n_pad:
        row_ids = jax.lax.broadcasted_iota(jnp.int32, conv_out.shape, 0)
        conv_out = jnp.where(row_ids < n_real, conv_out, 0.0)

    o_ref[...] = jnp.max(conv_out, axis=0, keepdims=True)


# ---------------------------------------------------------------------------
# Glue (plain JAX): dense GCN-normalized adjacency from edge_index
# (matches torch_geometric GCNConv default: add self loops, symmetric norm).
# ---------------------------------------------------------------------------
def gcn_norm_dense(edge_index, num_nodes):
    src, dst = edge_index[0], edge_index[1]
    loop = jnp.arange(num_nodes, dtype=edge_index.dtype)
    src = jnp.concatenate([src, loop])
    dst = jnp.concatenate([dst, loop])
    ones = jnp.ones(src.shape[0], jnp.float32)
    deg = jnp.zeros((num_nodes,), jnp.float32).at[dst].add(ones)
    deg_inv_sqrt = jnp.where(deg > 0.0, jax.lax.rsqrt(deg), 0.0)
    norm = deg_inv_sqrt[src] * deg_inv_sqrt[dst]
    a = jnp.zeros((num_nodes, num_nodes), jnp.float32).at[dst, src].add(norm)
    return a


# ---------------------------------------------------------------------------
# One-time parameter prep (hoisted out of the per-call forward).
# ---------------------------------------------------------------------------
def prepare_conv_params(params, compute_dtype=jnp.bfloat16):
    """Pad / stack / cast conv weights & biases once."""
    num_layers = len(params["conv_w"])
    h = params["conv_w"][0].shape[0]
    h_pad = max(128, _round_up(h, 128))        # lane-dense feature axis

    w_stack = jnp.zeros((num_layers, h_pad, h_pad), jnp.float32)
    b_stack = jnp.zeros((num_layers, 1, h_pad), jnp.float32)
    for i in range(num_layers):
        w_stack = w_stack.at[i, :h, :h].set(params["conv_w"][i])
        b_stack = b_stack.at[i, :, :h].set(params["conv_b"][i])

    return w_stack.astype(compute_dtype), b_stack


# ---------------------------------------------------------------------------
# Backbone forward (tensor branch of Vulnerability_backbone.forward)
# ---------------------------------------------------------------------------
def vulnerability_backbone_forward(w_stack, b_stack, feature_vec, edge_index, *, h):
    num_layers, h_pad, _ = w_stack.shape
    compute_dtype = w_stack.dtype

    n = feature_vec.shape[0]
    n_pad = max(8, _round_up(n, 8))            # sublane alignment

    a = gcn_norm_dense(edge_index, n)
    a_pad = jnp.zeros((n_pad, n_pad), compute_dtype).at[:n, :n].set(
        a.astype(compute_dtype))
    x_pad = jnp.zeros((n_pad, h_pad), compute_dtype).at[:n, :h].set(
        feature_vec.astype(compute_dtype))

    kernel = functools.partial(
        _fused_gcn_stack_kernel,
        num_layers=num_layers,
        n_real=n,
        n_pad=n_pad,
        compute_dtype=compute_dtype,
    )

    # --- VMEM budget sized from the actual (single-buffered) padded buffers.
    itemsize = jnp.dtype(compute_dtype).itemsize
    bytes_in = (n_pad * n_pad * itemsize            # A
                + n_pad * h_pad * itemsize          # X
                + num_layers * h_pad * h_pad * itemsize   # W stack
                + num_layers * h_pad * 4)           # bias stack (f32)
    bytes_out = h_pad * 4
    bytes_interm = 6 * n_pad * h_pad * 4             # xw / agg / conv_out temps
    vmem_limit = int(min(100 * 1024 * 1024,
                         max(32 * 1024 * 1024,
                             1.5 * (bytes_in + bytes_out + bytes_interm))))

    flops = (num_layers + 1) * (2 * n_pad * h_pad * h_pad
                                + 2 * n_pad * n_pad * h_pad)
    cost = pl.CostEstimate(flops=flops, transcendentals=0,
                           bytes_accessed=bytes_in + bytes_out)

    pooled = pl.pallas_call(
        kernel,
        out_shape=jax.ShapeDtypeStruct((1, h_pad), jnp.float32),
        # No grid: whole arrays land in VMEM once, single-buffered.
        in_specs=[
            pl.BlockSpec(memory_space=pltpu.MemorySpace.VMEM),   # A_norm
            pl.BlockSpec(memory_space=pltpu.MemorySpace.VMEM),   # X
            pl.BlockSpec(memory_space=pltpu.MemorySpace.VMEM),   # W stack
            pl.BlockSpec(memory_space=pltpu.MemorySpace.VMEM),   # bias stack
        ],
        out_specs=pl.BlockSpec(memory_space=pltpu.MemorySpace.VMEM),
        compiler_params=pltpu.CompilerParams(vmem_limit_bytes=vmem_limit),
        cost_estimate=cost,
    )(a_pad, x_pad, w_stack, b_stack)

    return pooled[:, :h]


# ---------------------------------------------------------------------------
# Pure-JAX references for correctness checking.
# ---------------------------------------------------------------------------
def _reference_forward(params, feature_vec, edge_index, compute_dtype=jnp.float32):
    n = feature_vec.shape[0]
    a = gcn_norm_dense(edge_index, n).astype(compute_dtype)
    layer_num = len(params["conv_w"])
    conv_output = None

    def conv_relu(x_in, i):
        w = params["conv_w"][i].astype(compute_dtype)
        xw = jnp.dot(x_in.astype(compute_dtype), w,
                     preferred_element_type=jnp.float32)
        agg = jnp.dot(a, xw.astype(compute_dtype),
                      preferred_element_type=jnp.float32)
        return jnp.maximum(agg + params["conv_b"][i], 0.0)

    x = feature_vec
    for i in range(layer_num):
        x = conv_relu(x, i)
        if i == layer_num - 1:
            conv_output = conv_relu(x, i)
    return jnp.max(conv_output, axis=0, keepdims=True)


def init_params(key, h_size, num_conv_layers):
    kw, kb = jax.random.split(key)
    ws = 0.1 * jax.random.normal(kw, (num_conv_layers, h_size, h_size), jnp.float32)
    bs = 0.1 * jax.random.normal(kb, (num_conv_layers, 1, h_size), jnp.float32)
    return {
        "conv_w": [ws[i] for i in range(num_conv_layers)],
        "conv_b": [bs[i] for i in range(num_conv_layers)],
    }


if __name__ == "__main__":
    h_size = 32
    num_conv_layers = 3
    num_nodes = 8

    key = jax.random.PRNGKey(0)
    k_param, k_feat = jax.random.split(key)
    params = init_params(k_param, h_size, num_conv_layers)

    # feature_vec plays the role of `my_data` in the non-list branch: [N, h_size]
    feature_vec = jax.random.normal(k_feat, (num_nodes, h_size), jnp.float32)
    edge_index = jnp.array(
        [
            [0, 1, 2, 3, 4, 5, 6, 7, 0, 2, 4, 6],
            [1, 2, 3, 4, 5, 6, 7, 0, 3, 5, 7, 1],
        ],
        dtype=jnp.int32,
    )

    # One-time parameter prep (padding / stacking / bf16 cast hoisted out of
    # the per-call forward).
    w_stack, b_stack = prepare_conv_params(params, compute_dtype=jnp.bfloat16)

    forward = jax.jit(
        functools.partial(vulnerability_backbone_forward, h=h_size))
    out = forward(w_stack, b_stack, feature_vec, edge_index)
    out = jax.block_until_ready(out)
    assert out.shape == (1, h_size)

    # Tight check against a reference using the same precision policy
    # (bf16 MXU inputs, f32 accumulation/epilogue).
    ref_bf16 = _reference_forward(params, feature_vec, edge_index,
                                  compute_dtype=jnp.bfloat16)
    assert jnp.allclose(out, ref_bf16, atol=1e-4, rtol=1e-4)

    # Sanity check against the all-f32 reference (looser: bf16 MXU inputs).
    ref_f32 = _reference_forward(params, feature_vec, edge_index,
                                 compute_dtype=jnp.float32)
    assert jnp.allclose(out, ref_f32, atol=5e-2, rtol=5e-2)

    print("KERNEL_OK")
</pallas_src>

<mosaic_0001>
module attributes {stable_mosaic.version = 11 : i64} {
  func.func @_fused_gcn_stack_kernel(%arg0: memref<8x8xbf16, #tpu.memory_space<vmem>>, %arg1: memref<8x128xbf16, #tpu.memory_space<vmem>>, %arg2: memref<3x128x128xbf16, #tpu.memory_space<vmem>>, %arg3: memref<3x1x128xf32, #tpu.memory_space<vmem>>, %arg4: memref<1x128xf32, #tpu.memory_space<vmem>>) attributes {dimension_semantics = [], scalar_prefetch = 0 : i64, scratch_operands = 0 : i64, tpu.core_type = #tpu.core_type<tc>} {
    %c0 = arith.constant 0 : index
    %c0_0 = arith.constant 0 : index
    %0 = vector.load %arg0[%c0, %c0_0] : memref<8x8xbf16, #tpu.memory_space<vmem>>, vector<8x8xbf16>
    %c0_1 = arith.constant 0 : index
    %c0_2 = arith.constant 0 : index
    %1 = vector.load %arg1[%c0_1, %c0_2] : memref<8x128xbf16, #tpu.memory_space<vmem>>, vector<8x128xbf16>
    %c0_3 = arith.constant 0 : index
    %c0_4 = arith.constant 0 : index
    %c0_5 = arith.constant 0 : index
    %2 = vector.load %arg2[%c0_3, %c0_4, %c0_5] : memref<3x128x128xbf16, #tpu.memory_space<vmem>>, vector<1x128x128xbf16>
    %3 = vector.shape_cast %2 : vector<1x128x128xbf16> to vector<128x128xbf16>
    %cst = arith.constant dense<0.000000e+00> : vector<8x128xf32>
    %4 = tpu.matmul %1, %3, %cst {dimension_numbers = #tpu.dot_dimension_numbers<[1], [0], [0], [1], [0, 0, 1, 1], [], []>} : vector<8x128xbf16>, vector<128x128xbf16>, vector<8x128xf32> -> vector<8x128xf32>
    %5 = arith.truncf %4 : vector<8x128xf32> to vector<8x128xbf16>
    %cst_6 = arith.constant dense<0.000000e+00> : vector<8x128xf32>
    %6 = tpu.matmul %0, %5, %cst_6 {dimension_numbers = #tpu.dot_dimension_numbers<[1], [0], [0], [1], [0, 0, 1, 1], [], []>} : vector<8x8xbf16>, vector<8x128xbf16>, vector<8x128xf32> -> vector<8x128xf32>
    %c0_7 = arith.constant 0 : index
    %c0_8 = arith.constant 0 : index
    %c0_9 = arith.constant 0 : index
    %7 = vector.load %arg3[%c0_7, %c0_8, %c0_9] : memref<3x1x128xf32, #tpu.memory_space<vmem>>, vector<1x1x128xf32>
    %8 = vector.shape_cast %7 : vector<1x1x128xf32> to vector<1x128xf32>
    %9 = vector.broadcast %8 : vector<1x128xf32> to vector<8x128xf32>
    %10 = arith.addf %6, %9 : vector<8x128xf32>
    %cst_10 = arith.constant 0.000000e+00 : f32
    %11 = vector.broadcast %cst_10 : f32 to vector<8x128xf32>
    %12 = arith.maximumf %10, %11 : vector<8x128xf32>
    %13 = arith.truncf %12 : vector<8x128xf32> to vector<8x128xbf16>
    %c1 = arith.constant 1 : index
    %c0_11 = arith.constant 0 : index
    %c0_12 = arith.constant 0 : index
    %14 = vector.load %arg2[%c1, %c0_11, %c0_12] : memref<3x128x128xbf16, #tpu.memory_space<vmem>>, vector<1x128x128xbf16>
    %15 = vector.shape_cast %14 : vector<1x128x128xbf16> to vector<128x128xbf16>
    %cst_13 = arith.constant dense<0.000000e+00> : vector<8x128xf32>
    %16 = tpu.matmul %13, %15, %cst_13 {dimension_numbers = #tpu.dot_dimension_numbers<[1], [0], [0], [1], [0, 0, 1, 1], [], []>} : vector<8x128xbf16>, vector<128x128xbf16>, vector<8x128xf32> -> vector<8x128xf32>
    %17 = arith.truncf %16 : vector<8x128xf32> to vector<8x128xbf16>
    %cst_14 = arith.constant dense<0.000000e+00> : vector<8x128xf32>
    %18 = tpu.matmul %0, %17, %cst_14 {dimension_numbers = #tpu.dot_dimension_numbers<[1], [0], [0], [1], [0, 0, 1, 1], [], []>} : vector<8x8xbf16>, vector<8x128xbf16>, vector<8x128xf32> -> vector<8x128xf32>
    %c1_15 = arith.constant 1 : index
    %c0_16 = arith.constant 0 : index
    %c0_17 = arith.constant 0 : index
    %19 = vector.load %arg3[%c1_15, %c0_16, %c0_17] : memref<3x1x128xf32, #tpu.memory_space<vmem>>, vector<1x1x128xf32>
    %20 = vector.shape_cast %19 : vector<1x1x128xf32> to vector<1x128xf32>
    %21 = vector.broadcast %20 : vector<1x128xf32> to vector<8x128xf32>
    %22 = arith.addf %18, %21 : vector<8x128xf32>
    %cst_18 = arith.constant 0.000000e+00 : f32
    %23 = vector.broadcast %cst_18 : f32 to vector<8x128xf32>
    %24 = arith.maximumf %22, %23 : vector<8x128xf32>
    %25 = arith.truncf %24 : vector<8x128xf32> to vector<8x128xbf16>
    %c2 = arith.constant 2 : index
    %c0_19 = arith.constant 0 : index
    %c0_20 = arith.constant 0 : index
    %26 = vector.load %arg2[%c2, %c0_19, %c0_20] : memref<3x128x128xbf16, #tpu.memory_space<vmem>>, vector<1x128x128xbf16>
    %27 = vector.shape_cast %26 : vector<1x128x128xbf16> to vector<128x128xbf16>
    %cst_21 = arith.constant dense<0.000000e+00> : vector<8x128xf32>
    %28 = tpu.matmul %25, %27, %cst_21 {dimension_numbers = #tpu.dot_dimension_numbers<[1], [0], [0], [1], [0, 0, 1, 1], [], []>} : vector<8x128xbf16>, vector<128x128xbf16>, vector<8x128xf32> -> vector<8x128xf32>
    %29 = arith.truncf %28 : vector<8x128xf32> to vector<8x128xbf16>
    %cst_22 = arith.constant dense<0.000000e+00> : vector<8x128xf32>
    %30 = tpu.matmul %0, %29, %cst_22 {dimension_numbers = #tpu.dot_dimension_numbers<[1], [0], [0], [1], [0, 0, 1, 1], [], []>} : vector<8x8xbf16>, vector<8x128xbf16>, vector<8x128xf32> -> vector<8x128xf32>
    %c2_23 = arith.constant 2 : index
    %c0_24 = arith.constant 0 : index
    %c0_25 = arith.constant 0 : index
    %31 = vector.load %arg3[%c2_23, %c0_24, %c0_25] : memref<3x1x128xf32, #tpu.memory_space<vmem>>, vector<1x1x128xf32>
    %32 = vector.shape_cast %31 : vector<1x1x128xf32> to vector<1x128xf32>
    %33 = vector.broadcast %32 : vector<1x128xf32> to vector<8x128xf32>
    %34 = arith.addf %30, %33 : vector<8x128xf32>
    %cst_26 = arith.constant 0.000000e+00 : f32
    %35 = vector.broadcast %cst_26 : f32 to vector<8x128xf32>
    %36 = arith.maximumf %34, %35 : vector<8x128xf32>
    %37 = arith.truncf %36 : vector<8x128xf32> to vector<8x128xbf16>
    %c2_27 = arith.constant 2 : index
    %c0_28 = arith.constant 0 : index
    %c0_29 = arith.constant 0 : index
    %38 = vector.load %arg2[%c2_27, %c0_28, %c0_29] : memref<3x128x128xbf16, #tpu.memory_space<vmem>>, vector<1x128x128xbf16>
    %39 = vector.shape_cast %38 : vector<1x128x128xbf16> to vector<128x128xbf16>
    %cst_30 = arith.constant dense<0.000000e+00> : vector<8x128xf32>
    %40 = tpu.matmul %37, %39, %cst_30 {dimension_numbers = #tpu.dot_dimension_numbers<[1], [0], [0], [1], [0, 0, 1, 1], [], []>} : vector<8x128xbf16>, vector<128x128xbf16>, vector<8x128xf32> -> vector<8x128xf32>
    %41 = arith.truncf %40 : vector<8x128xf32> to vector<8x128xbf16>
    %cst_31 = arith.constant dense<0.000000e+00> : vector<8x128xf32>
    %42 = tpu.matmul %0, %41, %cst_31 {dimension_numbers = #tpu.dot_dimension_numbers<[1], [0], [0], [1], [0, 0, 1, 1], [], []>} : vector<8x8xbf16>, vector<8x128xbf16>, vector<8x128xf32> -> vector<8x128xf32>
    %c2_32 = arith.constant 2 : index
    %c0_33 = arith.constant 0 : index
    %c0_34 = arith.constant 0 : index
    %43 = vector.load %arg3[%c2_32, %c0_33, %c0_34] : memref<3x1x128xf32, #tpu.memory_space<vmem>>, vector<1x1x128xf32>
    %44 = vector.shape_cast %43 : vector<1x1x128xf32> to vector<1x128xf32>
    %45 = vector.broadcast %44 : vector<1x128xf32> to vector<8x128xf32>
    %46 = arith.addf %42, %45 : vector<8x128xf32>
    %cst_35 = arith.constant 0.000000e+00 : f32
    %47 = vector.broadcast %cst_35 : f32 to vector<8x128xf32>
    %48 = arith.maximumf %46, %47 : vector<8x128xf32>
    %cst_36 = arith.constant dense<0xFF800000> : vector<128xf32>
    %49 = vector.multi_reduction <maximumf>, %48, %cst_36 [0] : vector<8x128xf32> to vector<128xf32>
    %50 = vector.shape_cast %49 : vector<128xf32> to vector<1x128xf32>
    %c0_37 = arith.constant 0 : index
    %c0_38 = arith.constant 0 : index
    %51 = vector.load %arg4[%c0_37, %c0_38] : memref<1x128xf32, #tpu.memory_space<vmem>>, vector<1x128xf32>
    tpu.vector_store %arg4[%c0_37, %c0_38], %50 {strides = array<i32>} : memref<1x128xf32, #tpu.memory_space<vmem>>, vector<1x128xf32>,
    return
  }
}

</mosaic_0001>

<bundles_post_ra>
// kernel: mul.1
= control target key start
LH: loop header
LB: loop body
LE: loop exit
PB: predicated region body
PF: predicated region fallthrough
CT: control target
= control target key end

     0   :  { %s34_s0 = inlined_call_operand.vmem [shape: f32[20], index: 0, kind: input, shape index: {}]   ;;  %s35_s1 = inlined_call_operand.vmem [shape: f32[20], index: 1, kind: input, shape index: {}]   ;;  %s36_s2 = inlined_call_operand.vmem [shape: f32[20], index: 2, kind: output, shape index: {}]  }
   0x1   :  { %v3_v0 = vld [vmem:[%s34_s0] sm:$0x1] }
   0x2   :  { %v4_v1 = vld [vmem:[%s35_s1] sm:$0x1] }
   0x3   :  { %v7_v2 = vmul.f32 %v4_v1, %v3_v0 }
   0x5   :  { %9 = vst [vmem:[%s36_s2] sm:$0x1] %v7_v2 }

// kernel: vulnerability_backbone_forward.1
= control target key start
LH: loop header
LB: loop body
LE: loop exit
PB: predicated region body
PF: predicated region fallthrough
CT: control target
= control target key end

     0   :  { %v871_v1 = vmov 0.0   ;;  %vm872_vm0 = vmmov 0   ;;  %s1064_s0 = inlined_call_operand.vmem [shape: bf16[8,8], index: 0, kind: input, shape index: {}]   ;;  %s1065_s1 = inlined_call_operand.vmem [shape: bf16[8,128], index: 1, kind: input, shape index: {}]   ;;  %s1066_s2 = inlined_call_operand.vmem [shape: bf16[3,128,128], index: 2, kind: input, shape index: {}]   ;;  %s1067_s3 = inlined_call_operand.vmem [shape: f32[3,1,128], index: 3, kind: input, shape index: {}]   ;;  %s1068_s4 = inlined_call_operand.hbm [shape: f32[1,128], index: 4, kind: output, shape index: {}]  }
   0x1   :  { %v823_v0 = vld [vmem:[%s1066_s2] sm:$0xff]   ;;  %716 = vmatprep.subr.bf16.mxu0 %v871_v1  ;;  %736 = vmatprep.subr.bf16.mxu1 %v871_v1  ;;  %v824_v2 = vld [vmem:[%s1066_s2 + $0x8] sm:$0xff]   ;;  %v825_v3 = vld [vmem:[%s1066_s2 + $0x10] sm:$0xff]  }
   0x2   :  { %717 = vmatpush3.bf16.msra.mxu0 %v823_v0  ;;  %732 = vmatprep.mubr.msk.bf16.mxu0 %vm872_vm0, %v871_v1  ;;  %v826_v4 = vld [vmem:[%s1066_s2 + $0x18] sm:$0xff]   ;;  %v827_v5 = vld [vmem:[%s1066_s2 + $0x20] sm:$0xff]   ;;  %v828_v6 = vld [vmem:[%s1066_s2 + $0x28] sm:$0xff]  }
   0x3   :  { %718 = vmatprep.subr.bf16.mxu0 %v871_v1  ;;  %738 = vmatprep.mubr.msk.bf16.mxu1 %vm872_vm0, %v871_v1 }
   0x6   :  { %719 = vmatpush3.bf16.msra.mxu0 %v824_v2 }
   0x7   :  { %720 = vmatprep.subr.bf16.mxu0 %v871_v1 }
   0xa   :  { %721 = vmatpush3.bf16.msra.mxu0 %v825_v3 }
   0xb   :  { %722 = vmatprep.subr.bf16.mxu0 %v871_v1 }
   0xe   :  { %723 = vmatpush3.bf16.msra.mxu0 %v826_v4 }
   0xf   :  { %724 = vmatprep.subr.bf16.mxu0 %v871_v1 }
  0x12   :  { %725 = vmatpush3.bf16.msra.mxu0 %v827_v5 }
  0x13   :  { %726 = vmatprep.subr.bf16.mxu0 %v871_v1 }
  0x14   :  { %9 = vsyncpa [#allocation3], 0  ;;  %v829_v7 = vld [vmem:[%s1066_s2 + $0x30] sm:$0xff]   ;;  %v830_v8 = vld [vmem:[%s1066_s2 + $0x38] sm:$0xff]   ;;  %vm137_vm1 = vcmask 1043456   ;;  %vm133_vm2 = vcmask 64512  }
  0x15   :  { %v20_v9 = vld [vmem:[%s1065_s1] sm:$0xf]  ;;  %v832_v18 = vld [vmem:[%s1066_s2 + $0x48] sm:$0xff]   ;;  %v833_v19 = vld [vmem:[%s1066_s2 + $0x50] sm:$0xff]  }
  0x16   :  { %727 = vmatpush3.bf16.msra.mxu0 %v828_v6  ;;  %v946_v16 = vld [vmem:[%s1064_s0] sm:$0xf]  ;;  %v834_v20 = vld [vmem:[%s1066_s2 + $0x58] sm:$0xff]   ;;  %v836_v22 = vld [vmem:[%s1066_s2 + $0x68] sm:$0xff]  }
  0x17   :  { %728 = vmatprep.subr.bf16.mxu0 %v871_v1  ;;  %v831_v17 = vld [vmem:[%s1066_s2 + $0x40] sm:$0xff]   ;;  %v837_v23 = vld [vmem:[%s1066_s2 + $0x70] sm:$0xff]   ;;  %v838_v24 = vld [vmem:[%s1066_s2 + $0x78] sm:$0xff]  }
  0x18   :  { %v835_v21 = vld [vmem:[%s1066_s2 + $0x60] sm:$0xff]   ;;  %v840_v34 = vld [vmem:[%s1066_s2 + $0x88] sm:$0xff]   ;;  %v841_v35 = vld [vmem:[%s1066_s2 + $0x90] sm:$0xff]  }
  0x19   :  { %v615_v25 = vld [vmem:[%s1067_s3] ss:$0 sm:$0xff]  ;;  %v842_v36 = vld [vmem:[%s1066_s2 + $0x98] sm:$0xff]   ;;  %v844_v38 = vld [vmem:[%s1066_s2 + $0xa8] sm:$0xff]  }
  0x1a   :  { %729 = vmatpush3.bf16.msra.mxu0 %v829_v7  ;;  %v839_v33 = vld [vmem:[%s1066_s2 + $0x80] sm:$0xff]   ;;  %v845_v45 = vld [vmem:[%s1066_s2 + $0xb0] sm:$0xff]   ;;  %v846_v46 = vld [vmem:[%s1066_s2 + $0xb8] sm:$0xff]  }
  0x1b   :  { %730 = vmatprep.subr.bf16.mxu0 %v871_v1  ;;  %v843_v37 = vld [vmem:[%s1066_s2 + $0xa0] sm:$0xff]  }
  0x1c   :  { %v642_v47 = vld [vmem:[%s1067_s3 + $0x1] ss:$0 sm:$0xff]  ;;  %v669_v61 = vld [vmem:[%s1067_s3 + $0x2] ss:$0 sm:$0xff]  ;;  %s873_s3 = smov [#allocation2]  }
  0x1d   :  { %s599_s16 = sshll.u32 %s873_s3, 4  ;;  %s600_s16 = int_to_ptr.vmem [resolvable:$true] %s599_s16 }
  0x1e   :  { %731 = vmatpush3.bf16.msra.mxu0 %v830_v8  ;;  %s847_s17 = scalar_lea.vmem %s600_s16, 16  ;;  %s851_s18 = scalar_lea.vmem %s600_s16, 32 }
  0x1f   :  { %762 = vmatprep.subr.bf16.mxu0 %v871_v1  ;;  %p848_p0 = scmp.ne.s32.totalorder %s600_s16, %s847_s17  ;;  %p852_p1 = scmp.lt.s32.totalorder %s600_s16, %s600_s16 }
  0x20   :  { %p853_p2 = scmp.lt.s32.totalorder %s851_s18, %s847_s17 }
  0x21   :  { %733 = vmatmul.mubr.bf16.vlgmr.msra.gmra.mrb[0].mxu0 %v20_v9 }
  0x22   :  { %764 = vmatprep.mubr.msk.bf16.mxu0 %vm872_vm0, %v871_v1  ;;  %p854_p3 = por %p853_p2, %p852_p1 }
  0x24   :  { %p855_p4 = pnand %p854_p3, %p848_p0 }
  0xf4   :  { %v119_v10 = vpop.f32.mrb[0].mxu0 }
  0xf5   :  { %v125_v11 = vpack.c.bf16 %v119_v10, %v119_v10  ;;  %v734_v12 = vpop.f32.mrb[1].mxu0 }
  0xf6   :  { %v122_v13 = vpop.f32.mrb[2].mxu0 }
  0xf7   :  { %v735_v14 = vpop.f32.mrb[3].mxu0  ;;  %v139_v15 = vsel %vm137_vm1, %v125_v11, 0 }
  0xf8   :  { %737 = vmatpush3.bf16.msra.mxu1 %v139_v15 }
  0xf9   :  { %742 = vmatprep.subr.bf16.mxu1 %v871_v1 }
  0xfb   :  { %739 = vmatmul.mubr.msk.bf16.vlgmr.msra.gmra.mrb[0].mxu1 %vm133_vm2, %v946_v16 }
  0xfc   :  { %743 = vmatpush3.bf16.msra.mxu1 %v831_v17  ;;  %758 = vmatprep.mubr.msk.bf16.mxu1 %vm872_vm0, %v871_v1 }
  0xfd   :  { %744 = vmatprep.subr.bf16.mxu1 %v871_v1 }
 0x100   :  { %745 = vmatpush3.bf16.msra.mxu1 %v832_v18 }
 0x101   :  { %746 = vmatprep.subr.bf16.mxu1 %v871_v1 }
 0x104   :  { %747 = vmatpush3.bf16.msra.mxu1 %v833_v19 }
 0x105   :  { %748 = vmatprep.subr.bf16.mxu1 %v871_v1 }
 0x108   :  { %749 = vmatpush3.bf16.msra.mxu1 %v834_v20 }
 0x109   :  { %750 = vmatprep.subr.bf16.mxu1 %v871_v1 }
 0x10c   :  { %751 = vmatpush3.bf16.msra.mxu1 %v835_v21 }
 0x10d   :  { %752 = vmatprep.subr.bf16.mxu1 %v871_v1 }
 0x110   :  { %753 = vmatpush3.bf16.msra.mxu1 %v836_v22 }
 0x111   :  { %754 = vmatprep.subr.bf16.mxu1 %v871_v1 }
 0x114   :  { %755 = vmatpush3.bf16.msra.mxu1 %v837_v23 }
 0x115   :  { %756 = vmatprep.subr.bf16.mxu1 %v871_v1 }
 0x118   :  { %757 = vmatpush3.bf16.msra.mxu1 %v838_v24 }
 0x119   :  { %768 = vmatprep.subr.bf16.mxu1 %v871_v1 }
 0x1ce   :  { %v175_v26 = vpop.f32.mrb[0].mxu1 }
 0x1cf   :  { %v176_v27 = vadd.f32 %v615_v25, %v175_v26  ;;  %v740_v28 = vpop.f32.mrb[1].mxu1 }
 0x1d0   :  { %v178_v29 = vpop.f32.mrb[2].mxu1 }
 0x1d1   :  { %v181_v30 = vmax.f32 %v176_v27, 0.0  ;;  %v741_v31 = vpop.f32.mrb[3].mxu1 }
 0x1d3   :  { %v182_v32 = vpack.c.bf16 %v181_v30, %v181_v30 }
 0x1d5   :  { %759 = vmatmul.mubr.bf16.vlgmr.msra.gmra.mrb[4].mxu1 %v182_v32 }
 0x1d6   :  { %784 = vmatprep.mubr.msk.bf16.mxu1 %vm872_vm0, %v871_v1  ;;  %769 = vmatpush3.bf16.msra.mxu1 %v839_v33 }
 0x1d7   :  { %770 = vmatprep.subr.bf16.mxu1 %v871_v1 }
 0x1da   :  { %771 = vmatpush3.bf16.msra.mxu1 %v840_v34 }
 0x1db   :  { %772 = vmatprep.subr.bf16.mxu1 %v871_v1 }
 0x1de   :  { %773 = vmatpush3.bf16.msra.mxu1 %v841_v35 }
 0x1df   :  { %774 = vmatprep.subr.bf16.mxu1 %v871_v1 }
 0x1e2   :  { %775 = vmatpush3.bf16.msra.mxu1 %v842_v36 }
 0x1e3   :  { %776 = vmatprep.subr.bf16.mxu1 %v871_v1 }
 0x1e6   :  { %777 = vmatpush3.bf16.msra.mxu1 %v843_v37 }
 0x1e7   :  { %778 = vmatprep.subr.bf16.mxu1 %v871_v1 }
 0x1ea   :  { %779 = vmatpush3.bf16.msra.mxu1 %v844_v38 }
 0x1eb   :  { %780 = vmatprep.subr.bf16.mxu1 %v871_v1 }
 0x1ee   :  { %781 = vmatpush3.bf16.msra.mxu1 %v845_v45 }
 0x1ef   :  { %782 = vmatprep.subr.bf16.mxu1 %v871_v1 }
 0x1f2   :  { %783 = vmatpush3.bf16.msra.mxu1 %v846_v46 }
 0x1f3   :  { %814 = vmatprep.subr.bf16.mxu1 %v871_v1 }
 0x2a8   :  { %v282_v39 = vpop.f32.mrb[4].mxu1 }
 0x2a9   :  { %v288_v40 = vpack.c.bf16 %v282_v39, %v282_v39  ;;  %v760_v41 = vpop.f32.mrb[5].mxu1 }
 0x2aa   :  { %v285_v42 = vpop.f32.mrb[6].mxu1 }
 0x2ab   :  { %v298_v43 = vsel %vm137_vm1, %v288_v40, 0  ;;  %v761_v44 = vpop.f32.mrb[7].mxu1 }
 0x2ac   :  { %763 = vmatpush3.bf16.msra.mxu0 %v298_v43 }
 0x2ad   :  { %788 = vmatprep.subr.bf16.mxu0 %v871_v1 }
 0x2af   :  { %765 = vmatmul.mubr.msk.bf16.vlgmr.msra.gmra.mrb[4].mxu0 %vm133_vm2, %v946_v16 }
 0x2b0   :  { %790 = vmatprep.mubr.msk.bf16.mxu0 %vm872_vm0, %v871_v1 }
 0x382   :  { %v334_v48 = vpop.f32.mrb[4].mxu0 }
 0x383   :  { %v335_v49 = vadd.f32 %v642_v47, %v334_v48  ;;  %v766_v50 = vpop.f32.mrb[5].mxu0 }
 0x384   :  { %v337_v51 = vpop.f32.mrb[6].mxu0 }
 0x385   :  { %v340_v52 = vmax.f32 %v335_v49, 0.0  ;;  %v767_v53 = vpop.f32.mrb[7].mxu0 }
 0x387   :  { %v341_v54 = vpack.c.bf16 %v340_v52, %v340_v52 }
 0x389   :  { %785 = vmatmul.mubr.bf16.vlgmr.msra.gmra.mrb[8].mxu1 %v341_v54 }
 0x38a   :  { %816 = vmatprep.mubr.msk.bf16.mxu1 %vm872_vm0, %v871_v1 }
 0x45c   :  { %v441_v55 = vpop.f32.mrb[8].mxu1 }
 0x45d   :  { %v447_v56 = vpack.c.bf16 %v441_v55, %v441_v55  ;;  %v786_v57 = vpop.f32.mrb[9].mxu1 }
 0x45e   :  { %v444_v58 = vpop.f32.mrb[10].mxu1 }
 0x45f   :  { %v457_v59 = vsel %vm137_vm1, %v447_v56, 0  ;;  %v787_v60 = vpop.f32.mrb[11].mxu1 }
 0x460   :  { %789 = vmatpush3.bf16.msra.mxu0 %v457_v59 }
 0x461   :  { %794 = vmatprep.subr.bf16.mxu0 %v871_v1 }
 0x463   :  { %791 = vmatmul.mubr.msk.bf16.vlgmr.msra.gmra.mrb[8].mxu0 %vm133_vm2, %v946_v16 }
 0x464   :  { %795 = vmatpush3.bf16.msra.mxu0 %v839_v33  ;;  %810 = vmatprep.mubr.msk.bf16.mxu0 %vm872_vm0, %v871_v1 }
 0x465   :  { %796 = vmatprep.subr.bf16.mxu0 %v871_v1 }
 0x468   :  { %797 = vmatpush3.bf16.msra.mxu0 %v840_v34 }
 0x469   :  { %798 = vmatprep.subr.bf16.mxu0 %v871_v1 }
 0x46c   :  { %799 = vmatpush3.bf16.msra.mxu0 %v841_v35 }
 0x46d   :  { %800 = vmatprep.subr.bf16.mxu0 %v871_v1 }
 0x470   :  { %801 = vmatpush3.bf16.msra.mxu0 %v842_v36 }
 0x471   :  { %802 = vmatprep.subr.bf16.mxu0 %v871_v1 }
 0x474   :  { %803 = vmatpush3.bf16.msra.mxu0 %v843_v37 }
 0x475   :  { %804 = vmatprep.subr.bf16.mxu0 %v871_v1 }
 0x478   :  { %805 = vmatpush3.bf16.msra.mxu0 %v844_v38 }
 0x479   :  { %806 = vmatprep.subr.bf16.mxu0 %v871_v1 }
 0x47c   :  { %807 = vmatpush3.bf16.msra.mxu0 %v845_v45 }
 0x47d   :  { %808 = vmatprep.subr.bf16.mxu0 %v871_v1 }
 0x480   :  { %809 = vmatpush3.bf16.msra.mxu0 %v846_v46 }
 0x536   :  { %v493_v62 = vpop.f32.mrb[8].mxu0 }
 0x537   :  { %v494_v63 = vadd.f32 %v669_v61, %v493_v62  ;;  %v792_v0 = vpop.f32.mrb[9].mxu0 }
 0x538   :  { %v496_v2 = vpop.f32.mrb[10].mxu0 }
 0x539   :  { %v499_v3 = vmax.f32 %v494_v63, 0.0  ;;  %v793_v4 = vpop.f32.mrb[11].mxu0 }
 0x53b   :  { %v500_v5 = vpack.c.bf16 %v499_v3, %v499_v3 }
 0x53d   :  { %811 = vmatmul.mubr.bf16.vlgmr.msra.gmra.mrb[12].mxu0 %v500_v5 }
 0x610   :  { %v535_v6 = vpop.f32.mrb[12].mxu0 }
 0x611   :  { %v541_v7 = vpack.c.bf16 %v535_v6, %v535_v6  ;;  %v812_v8 = vpop.f32.mrb[13].mxu0 }
 0x612   :  { %v538_v9 = vpop.f32.mrb[14].mxu0 }
 0x613   :  { %v543_v10 = vsel %vm137_vm1, %v541_v7, 0  ;;  %v813_v1 = vpop.f32.mrb[15].mxu0 }
 0x614   :  { %815 = vmatpush3.bf16.msra.mxu1 %v543_v10 }
 0x617   :  { %817 = vmatmul.mubr.msk.bf16.vlgmr.msra.gmra.mrb[12].mxu1 %vm133_vm2, %v946_v16 }
 0x6ea   :  { %v579_v11 = vpop.f32.mrb[12].mxu1 }
 0x6eb   :  { %v580_v12 = vadd.f32 %v669_v61, %v579_v11  ;;  %v818_v13 = vpop.f32.mrb[13].mxu1 }
 0x6ec   :  { %v582_v14 = vpop.f32.mrb[14].mxu1 }
 0x6ed   :  { %v585_v15 = vmax.f32 %v580_v12, 0.0  ;;  %v819_v17 = vpop.f32.mrb[15].mxu1 }
 0x6ef   :  { %v586_v18 = vrot.slane %v585_v15, 4 }
 0x6f1   :  { %v587_v19 = vmax.f32 %v585_v15, %v586_v18 }
 0x6f3   :  { %v588_v20 = vrot.slane %v587_v19, 2 }
 0x6f5   :  { %v589_v21 = vmax.f32 %v587_v19, %v588_v20 }
 0x6f7   :  { %v590_v22 = vrot.slane %v589_v21, 1 }
 0x6f9   :  { %v591_v23 = vmax.f32 %v589_v21, %v590_v22 }
 0x6fb   :  { %592 = vst [vmem:[#allocation2] sm:$0x1] %v591_v23 }
 0x6fc   :  { %858 = shalt.err (!%p855_p4)
}
 0x6fd   :  { %s859_s21 = scalar_lea.hbm %s1068_s4, 16 }
 0x6fe   :  { %p860_p5 = scmp.ne.s32.totalorder %s1068_s4, %s859_s21  ;;  %p863_p6 = scmp.lt.u32.totalorder %s859_s21, %s1068_s4 }
 0x700   :  { %p865_p7 = pnand %p863_p6, %p860_p5 }
 0x702   :  { %868 = shalt.err (!%p865_p7)
}
 0x703   :  { %602 = dma.vmem_to_hbm [thread:$0]  %s600_s16, 16, %s1068_s4, [#allocation3]  }
 0x704   :  { %869 = dma.done.wait [#allocation3], 16  }
 0x705   :  { %870 = vsyncadd [#allocation3], 4294967280 }
 0x706   :  { %606 = vsyncpa [#allocation3], 1 }

</bundles_post_ra>
